<compile_context>
chip_gen: v7x
topology: tpu7x:2x2x1
jax: 0.10.0
libtpu: 0.0.40
codegen_flags: <defaults>
</compile_context>

<pallas_src>
import jax
import jax.numpy as jnp
from jax.experimental import pallas as pl
from jax.experimental.pallas import tpu as pltpu


def _round_up(x, m):
    return (x + m - 1) // m * m


# ----------------------------- Pallas kernels ------------------------------ #

def _gemm_bn_relu_kernel(a_ref, w_ref, shift_ref, o_ref, acc_ref):
    """(tm,tk)@(tk,tn) accumulated over grid axis 2; epilogue: + shift, ReLU."""
    @pl.when(pl.program_id(2) == 0)
    def _():
        acc_ref[...] = jnp.zeros_like(acc_ref)

    acc_ref[...] += jnp.dot(a_ref[...], w_ref[...],
                            preferred_element_type=jnp.float32)

    @pl.when(pl.program_id(2) == pl.num_programs(2) - 1)
    def _():
        y = acc_ref[...] + shift_ref[...]
        o_ref[...] = jnp.maximum(y, 0.0).astype(o_ref.dtype)


def _gemm_bn_add_relu_kernel(a_ref, w_ref, shift_ref, res_ref, o_ref, acc_ref):
    """Same as above plus residual add in the final-k epilogue."""
    @pl.when(pl.program_id(2) == 0)
    def _():
        acc_ref[...] = jnp.zeros_like(acc_ref)

    acc_ref[...] += jnp.dot(a_ref[...], w_ref[...],
                            preferred_element_type=jnp.float32)

    @pl.when(pl.program_id(2) == pl.num_programs(2) - 1)
    def _():
        y = acc_ref[...] + shift_ref[...] + res_ref[...].astype(jnp.float32)
        o_ref[...] = jnp.maximum(y, 0.0).astype(o_ref.dtype)


# ------------------------------ JAX glue ----------------------------------- #

def _im2col_3x3(x_nhwc, stride=1):
    """pad=1, kernel=3 im2col.  Returns (N*Ho*Wo, 9*C) and output dims."""
    N, H, W, C = x_nhwc.shape
    Ho = (H + 2 - 3) // stride + 1
    Wo = (W + 2 - 3) // stride + 1
    xp = jnp.pad(x_nhwc, ((0, 0), (1, 1), (1, 1), (0, 0)))
    cols = []
    for dh in range(3):
        for dw in range(3):
            cols.append(
                xp[:, dh:dh + stride * (Ho - 1) + 1:stride,
                      dw:dw + stride * (Wo - 1) + 1:stride, :])
    patches = jnp.concatenate(cols, axis=-1)          # (N, Ho, Wo, 9*C)
    return patches.reshape(N * Ho * Wo, 9 * C), (N, Ho, Wo)


def conv3x3_bn_relu_pallas(x_nhwc, w_hwio, scale, shift, residual=None,
                           stride=1, compute_dtype=jnp.bfloat16,
                           out_dtype=jnp.float32, tm=512, tn=128, k_cap=2048):
    """Fused conv3x3(pad=1) + BN(eval, folded) + [residual add] + ReLU."""
    a, (N, Ho, Wo) = _im2col_3x3(x_nhwc, stride)
    M, K = a.shape
    Cin, Cout = w_hwio.shape[2], w_hwio.shape[3]
    assert K == 9 * Cin

    # Fold the BN scale into the weights host-side (epilogue becomes +shift).
    wmat = (w_hwio.reshape(K, Cout).astype(jnp.float32)
            * scale.reshape(1, Cout).astype(jnp.float32))

    # --- tile / padding choices (lane-dense output, MXU-friendly K) -------- #
    tn_eff = tn                                  # output lanes: multiple of 128
    Np = _round_up(Cout, tn_eff)
    tm_eff = min(tm, _round_up(M, 8))            # M tile: multiple of 8
    Mp = _round_up(M, tm_eff)
    if K <= k_cap:                               # full-K for small/early layers
        tk_eff, Kp = K, K
    else:
        tk_eff = 512
        Kp = _round_up(K, tk_eff)

    a_p = jnp.pad(a.astype(compute_dtype), ((0, Mp - M), (0, Kp - K)))
    w_p = jnp.pad(wmat.astype(compute_dtype), ((0, Kp - K), (0, Np - Cout)))
    shift_p = jnp.pad(shift.reshape(1, Cout).astype(jnp.float32),
                      ((0, 0), (0, Np - Cout)))

    grid = (Mp // tm_eff, Np // tn_eff, Kp // tk_eff)
    a_spec = pl.BlockSpec((tm_eff, tk_eff), lambda i, j, k: (i, k))
    w_spec = pl.BlockSpec((tk_eff, tn_eff), lambda i, j, k: (k, j))
    s_spec = pl.BlockSpec((1, tn_eff), lambda i, j, k: (0, j))
    o_spec = pl.BlockSpec((tm_eff, tn_eff), lambda i, j, k: (i, j))
    scratch = [pltpu.VMEM((tm_eff, tn_eff), jnp.float32)]

    cparams = pltpu.CompilerParams(
        dimension_semantics=("parallel", "parallel", "arbitrary"),
        vmem_limit_bytes=48 * 1024 * 1024)       # safe on v5e/v6e/v7x; tiles ~MBs

    itemsize = jnp.dtype(compute_dtype).itemsize
    bytes_accessed = (Mp * Kp * itemsize + Kp * Np * itemsize
                      + Mp * Np * jnp.dtype(out_dtype).itemsize
                      + (Mp * Np * 4 if residual is not None else 0))
    cost = pl.CostEstimate(flops=2 * Mp * Kp * Np, transcendentals=0,
                           bytes_accessed=bytes_accessed)

    out_shape = jax.ShapeDtypeStruct((Mp, Np), out_dtype)

    if residual is None:
        out = pl.pallas_call(
            _gemm_bn_relu_kernel,
            out_shape=out_shape,
            grid_spec=pltpu.PrefetchScalarGridSpec(
                num_scalar_prefetch=0, grid=grid,
                in_specs=[a_spec, w_spec, s_spec],
                out_specs=o_spec,
                scratch_shapes=scratch),
            compiler_params=cparams,
            cost_estimate=cost,
        )(a_p, w_p, shift_p)
    else:
        res = residual.reshape(M, Cout).astype(jnp.float32)
        res = jnp.pad(res, ((0, Mp - M), (0, Np - Cout)))
        r_spec = pl.BlockSpec((tm_eff, tn_eff), lambda i, j, k: (i, j))
        out = pl.pallas_call(
            _gemm_bn_add_relu_kernel,
            out_shape=out_shape,
            grid_spec=pltpu.PrefetchScalarGridSpec(
                num_scalar_prefetch=0, grid=grid,
                in_specs=[a_spec, w_spec, s_spec, r_spec],
                out_specs=o_spec,
                scratch_shapes=scratch),
            compiler_params=cparams,
            cost_estimate=cost,
        )(a_p, w_p, shift_p, res)

    return out[:M, :Cout].reshape(N, Ho, Wo, Cout)


def _bn_fold(gamma, beta, mean, var, eps=1e-5):
    scale = gamma / jnp.sqrt(var + eps)
    shift = beta - mean * scale
    return scale, shift


def basic_block_forward_nhwc(x_nhwc, params, compute_dtype=jnp.bfloat16):
    """BasicBlock.forward in NHWC (stride=1, identity shortcut)."""
    s1, b1 = _bn_fold(params["gamma1"], params["beta1"],
                      params["mean1"], params["var1"])
    s2, b2 = _bn_fold(params["gamma2"], params["beta2"],
                      params["mean2"], params["var2"])
    # conv1 + bn1 + relu  (intermediate kept in compute dtype -> halves HBM
    # writeback and feeds the next MXU matmul without an extra cast)
    h = conv3x3_bn_relu_pallas(x_nhwc, params["w1"], s1, b1,
                               compute_dtype=compute_dtype,
                               out_dtype=compute_dtype)
    # conv2 + bn2 + residual add + relu (epilogue in f32)
    out = conv3x3_bn_relu_pallas(h, params["w2"], s2, b2, residual=x_nhwc,
                                 compute_dtype=compute_dtype,
                                 out_dtype=x_nhwc.dtype)
    return out


def basic_block_forward(x_nchw, params, compute_dtype=jnp.bfloat16):
    """PyTorch-layout wrapper: converts NCHW<->NHWC once around the block."""
    x = jnp.transpose(x_nchw, (0, 2, 3, 1))
    out = basic_block_forward_nhwc(x, params, compute_dtype=compute_dtype)
    return jnp.transpose(out, (0, 3, 1, 2))


# --------------------------- pure-JAX reference ----------------------------- #

def _ref_block_nhwc(x_nhwc, params, eps=1e-5):
    def conv(x, w):
        return jax.lax.conv_general_dilated(
            x, w, window_strides=(1, 1), padding=((1, 1), (1, 1)),
            dimension_numbers=("NHWC", "HWIO", "NHWC"))
    h = conv(x_nhwc, params["w1"])
    h = (h - params["mean1"]) / jnp.sqrt(params["var1"] + eps) * params["gamma1"] + params["beta1"]
    h = jnp.maximum(h, 0.0)
    h = conv(h, params["w2"])
    h = (h - params["mean2"]) / jnp.sqrt(params["var2"] + eps) * params["gamma2"] + params["beta2"]
    h = h + x_nhwc
    return jnp.maximum(h, 0.0)


# --------------------------------- main ------------------------------------ #

if __name__ == "__main__":
    key = jax.random.PRNGKey(0)
    ks = jax.random.split(key, 12)

    N, Cin, H, W = 2, 4, 16, 16
    Cout = 4  # expansion = 1, identity shortcut

    params = dict(
        w1=jax.random.normal(ks[0], (3, 3, Cin, Cout), jnp.float32) * 0.1,
        gamma1=jax.random.uniform(ks[1], (Cout,), jnp.float32, 0.5, 1.5),
        beta1=jax.random.normal(ks[2], (Cout,), jnp.float32) * 0.1,
        mean1=jax.random.normal(ks[3], (Cout,), jnp.float32) * 0.1,
        var1=jax.random.uniform(ks[4], (Cout,), jnp.float32, 0.5, 1.5),
        w2=jax.random.normal(ks[5], (3, 3, Cout, Cout), jnp.float32) * 0.1,
        gamma2=jax.random.uniform(ks[6], (Cout,), jnp.float32, 0.5, 1.5),
        beta2=jax.random.normal(ks[7], (Cout,), jnp.float32) * 0.1,
        mean2=jax.random.normal(ks[8], (Cout,), jnp.float32) * 0.1,
        var2=jax.random.uniform(ks[9], (Cout,), jnp.float32, 0.5, 1.5),
    )

    x = jax.random.normal(ks[10], (N, Cin, H, W), jnp.float32)

    ref = _ref_block_nhwc(jnp.transpose(x, (0, 2, 3, 1)), params)
    ref = jnp.transpose(ref, (0, 3, 1, 2))

    # Default (fast) bf16-operand path: loose tolerance vs f32 reference.
    out_bf16 = jax.block_until_ready(
        basic_block_forward(x, params, compute_dtype=jnp.bfloat16))
    assert out_bf16.shape == (N, Cout, H, W)
    assert jnp.allclose(out_bf16, ref, atol=5e-2, rtol=5e-2), "bf16 path mismatch"

    # f32-operand path: tight tolerance correctness check of the same kernels.
    out_f32 = jax.block_until_ready(
        basic_block_forward(x, params, compute_dtype=jnp.float32))
    assert jnp.allclose(out_f32, ref, atol=1e-4, rtol=1e-4), "f32 path mismatch"

    print("KERNEL_OK")
</pallas_src>

<mosaic_0001>
module attributes {stable_mosaic.version = 11 : i64} {
  func.func @_gemm_bn_relu_kernel(%arg0: i32, %arg1: i32, %arg2: i32, %arg3: memref<512x36xbf16, #tpu.memory_space<vmem>>, %arg4: memref<36x128xbf16, #tpu.memory_space<vmem>>, %arg5: memref<1x128xf32, #tpu.memory_space<vmem>>, %arg6: memref<512x128xbf16, #tpu.memory_space<vmem>>, %arg7: memref<512x128xf32, #tpu.memory_space<vmem>>) attributes {dimension_semantics = [#tpu.dimension_semantics<parallel>, #tpu.dimension_semantics<parallel>, #tpu.dimension_semantics<arbitrary>], iteration_bounds = array<i64: 1, 1, 1>, scalar_prefetch = 0 : i64, scratch_operands = 1 : i64, tpu.core_type = #tpu.core_type<tc>, window_params = [{transform_indices = @transform_0, window_bounds = array<i64: 512, 36>}, {transform_indices = @transform_1, window_bounds = array<i64: 36, 128>}, {transform_indices = @transform_2, window_bounds = array<i64: 1, 128>}, {transform_indices = @transform_3, window_bounds = array<i64: 512, 128>}]} {
    %c0_i32 = arith.constant 0 : i32
    %0 = arith.cmpi eq, %arg2, %c0_i32 : i32
    %1 = arith.extui %0 : i1 to i32
    %c0_i32_0 = arith.constant 0 : i32
    %2 = arith.cmpi ne, %1, %c0_i32_0 : i32
    scf.if %2 {
      %cst_10 = arith.constant 0.000000e+00 : f32
      %12 = vector.broadcast %cst_10 : f32 to vector<512x128xf32>
      %c0_11 = arith.constant 0 : index
      %c0_12 = arith.constant 0 : index
      %13 = vector.load %arg7[%c0_11, %c0_12] : memref<512x128xf32, #tpu.memory_space<vmem>>, vector<512x128xf32>
      tpu.vector_store %arg7[%c0_11, %c0_12], %12 {strides = array<i32>} : memref<512x128xf32, #tpu.memory_space<vmem>>, vector<512x128xf32>,
    } else {
    }
    %c0 = arith.constant 0 : index
    %c0_1 = arith.constant 0 : index
    %3 = vector.load %arg7[%c0, %c0_1] : memref<512x128xf32, #tpu.memory_space<vmem>>, vector<512x128xf32>
    %c0_2 = arith.constant 0 : index
    %c0_3 = arith.constant 0 : index
    %4 = vector.load %arg3[%c0_2, %c0_3] : memref<512x36xbf16, #tpu.memory_space<vmem>>, vector<512x36xbf16>
    %c0_4 = arith.constant 0 : index
    %c0_5 = arith.constant 0 : index
    %5 = vector.load %arg4[%c0_4, %c0_5] : memref<36x128xbf16, #tpu.memory_space<vmem>>, vector<36x128xbf16>
    %cst = arith.constant dense<0.000000e+00> : vector<512x128xf32>
    %6 = tpu.matmul %4, %5, %cst {dimension_numbers = #tpu.dot_dimension_numbers<[1], [0], [0], [1], [0, 0, 1, 1], [], []>} : vector<512x36xbf16>, vector<36x128xbf16>, vector<512x128xf32> -> vector<512x128xf32>
    %7 = arith.addf %3, %6 : vector<512x128xf32>
    %c0_6 = arith.constant 0 : index
    %c0_7 = arith.constant 0 : index
    %8 = vector.load %arg7[%c0_6, %c0_7] : memref<512x128xf32, #tpu.memory_space<vmem>>, vector<512x128xf32>
    tpu.vector_store %arg7[%c0_6, %c0_7], %7 {strides = array<i32>} : memref<512x128xf32, #tpu.memory_space<vmem>>, vector<512x128xf32>,
    %c0_i32_8 = arith.constant 0 : i32
    %9 = arith.cmpi eq, %arg2, %c0_i32_8 : i32
    %10 = arith.extui %9 : i1 to i32
    %c0_i32_9 = arith.constant 0 : i32
    %11 = arith.cmpi ne, %10, %c0_i32_9 : i32
    scf.if %11 {
      %c0_10 = arith.constant 0 : index
      %c0_11 = arith.constant 0 : index
      %12 = vector.load %arg7[%c0_10, %c0_11] : memref<512x128xf32, #tpu.memory_space<vmem>>, vector<512x128xf32>
      %c0_12 = arith.constant 0 : index
      %c0_13 = arith.constant 0 : index
      %13 = vector.load %arg5[%c0_12, %c0_13] : memref<1x128xf32, #tpu.memory_space<vmem>>, vector<1x128xf32>
      %14 = vector.broadcast %13 : vector<1x128xf32> to vector<512x128xf32>
      %15 = arith.addf %12, %14 : vector<512x128xf32>
      %cst_14 = arith.constant 0.000000e+00 : f32
      %16 = vector.broadcast %cst_14 : f32 to vector<512x128xf32>
      %17 = arith.maximumf %15, %16 : vector<512x128xf32>
      %18 = arith.truncf %17 : vector<512x128xf32> to vector<512x128xbf16>
      %c0_15 = arith.constant 0 : index
      %c0_16 = arith.constant 0 : index
      %19 = vector.load %arg6[%c0_15, %c0_16] : memref<512x128xbf16, #tpu.memory_space<vmem>>, vector<512x128xbf16>
      tpu.vector_store %arg6[%c0_15, %c0_16], %18 {strides = array<i32>} : memref<512x128xbf16, #tpu.memory_space<vmem>>, vector<512x128xbf16>,
    } else {
    }
    return
  }
  func.func @transform_0(%arg0: i32, %arg1: i32, %arg2: i32) -> (i32, i32) {
    %c0_i32 = arith.constant 0 : i32
    return %arg0, %arg2 : i32, i32
  }
  func.func @transform_1(%arg0: i32, %arg1: i32, %arg2: i32) -> (i32, i32) {
    %c0_i32 = arith.constant 0 : i32
    return %arg2, %arg1 : i32, i32
  }
  func.func @transform_2(%arg0: i32, %arg1: i32, %arg2: i32) -> (i32, i32) {
    %c0_i32 = arith.constant 0 : i32
    %c0_i32_0 = arith.constant 0 : i32
    return %c0_i32, %arg1 : i32, i32
  }
  func.func @transform_3(%arg0: i32, %arg1: i32, %arg2: i32) -> (i32, i32) {
    %c0_i32 = arith.constant 0 : i32
    return %arg0, %arg1 : i32, i32
  }
}

</mosaic_0001>

<bundles_post_ra>
// kernel: tpu_custom_call.1
= control target key start
LH: loop header
LB: loop body
LE: loop exit
PB: predicated region body
PF: predicated region fallthrough
CT: control target
= control target key end

     0   :  { %vm392_vm0 = vcmask 293888   ;;  %vm489_vm1 = vcmask 1041408   ;;  %s2251_s0 = inlined_call_operand.vmem [shape: bf16[512,36], index: 0, kind: input, shape index: {}]   ;;  %s2252_s1 = inlined_call_operand.vmem [shape: bf16[36,128], index: 1, kind: input, shape index: {}]   ;;  %s2253_s2 = inlined_call_operand.vmem [shape: f32[1,128], index: 2, kind: input, shape index: {}]   ;;  %s2254_s3 = inlined_call_operand.hbm [shape: bf16[512,128], index: 3, kind: output, shape index: {}]  }
   0x1   :  { %v1951_v0 = vld [vmem:[%s2252_s1] sm:$0xff]   ;;  %v1952_v1 = vld [vmem:[%s2252_s1 + $0x8] sm:$0xff]   ;;  %v1953_v2 = vld [vmem:[%s2252_s1 + $0x10] ss:$0 sps:$4 sm:$0x33]  }
   0x2   :  { %1870 = vmatprep.subr.bf16.mxu0 %v1951_v0  ;;  %1940 = vmatprep.subr.bf16.mxu1 %v1951_v0  ;;  %v1954_v3 = vld [vmem:[%s2251_s0] sm:$0xff]   ;;  %v491_v5 = vsel %vm489_vm1, %v1953_v2, 0  ;;  %v1956_v6 = vld [vmem:[%s2251_s0 + $0x8] sm:$0xff]   ;;  %v1958_v8 = vld [vmem:[%s2251_s0 + $0x10] sm:$0xff]  }
   0x3   :  { %1871 = vmatpush3.bf16.msra.mxu0 %v1951_v0  ;;  %1943 = vmatpush3.bf16.msra.mxu1 %v1951_v0  ;;  %v1955_v4 = vld [vmem:[%s2251_s0 + $0x80] sm:$0xff]   ;;  %v1957_v7 = vld [vmem:[%s2251_s0 + $0x88] sm:$0xff]   ;;  %v1959_v9 = vld [vmem:[%s2251_s0 + $0x90] sm:$0xff]  }
   0x4   :  { %1872 = vmatprep.subr.bf16.mxu0 %v1952_v1  ;;  %1941 = vmatprep.subr.bf16.mxu1 %v1952_v1  ;;  %v1960_v10 = vld [vmem:[%s2251_s0 + $0x18] sm:$0xff]   ;;  %v1962_v12 = vld [vmem:[%s2251_s0 + $0x20] sm:$0xff]   ;;  %v1964_v14 = vld [vmem:[%s2251_s0 + $0x28] sm:$0xff]  }
   0x5   :  { %1876 = vmatprep.mubr.msk.bf16.mxu0 %vm392_vm0, %v1954_v3  ;;  %1908 = vmatprep.mubr.msk.bf16.mxu1 %vm392_vm0, %v1955_v4  ;;  %v1961_v11 = vld [vmem:[%s2251_s0 + $0x98] sm:$0xff]   ;;  %v1963_v13 = vld [vmem:[%s2251_s0 + $0xa0] sm:$0xff]   ;;  %v1965_v15 = vld [vmem:[%s2251_s0 + $0xa8] sm:$0xff]  }
   0x6   :  { %v1966_v16 = vld [vmem:[%s2251_s0 + $0x30] sm:$0xff]   ;;  %v1968_v18 = vld [vmem:[%s2251_s0 + $0x38] sm:$0xff]  }
   0x7   :  { %1873 = vmatpush3.bf16.msra.mxu0 %v1952_v1  ;;  %1944 = vmatpush3.bf16.msra.mxu1 %v1952_v1  ;;  %v1967_v17 = vld [vmem:[%s2251_s0 + $0xb0] sm:$0xff]   ;;  %v1969_v19 = vld [vmem:[%s2251_s0 + $0xb8] sm:$0xff]  }
   0x8   :  { %1946 = vmatprep.subr.msk.bf16.mxu0 %vm489_vm1, %v1953_v2  ;;  %1947 = vmatprep.subr.msk.bf16.mxu1 %vm489_vm1, %v1953_v2 }
   0xb   :  { %1875 = vmatpush3.bf16.msra.mxu0 %v491_v5  ;;  %1945 = vmatpush3.bf16.msra.mxu1 %v491_v5 }
   0xe   :  { %1877 = vmatmul.mubr.msk.bf16.vlgmr.msra.gmra.mrb[0].mxu0 %vm392_vm0, %v1956_v6  ;;  %1909 = vmatmul.mubr.msk.bf16.vlgmr.msra.gmra.mrb[0].mxu1 %vm392_vm0, %v1957_v7 }
   0xf   :  { %1880 = vmatprep.mubr.msk.bf16.mxu0 %vm392_vm0, %v1958_v8  ;;  %1912 = vmatprep.mubr.msk.bf16.mxu1 %vm392_vm0, %v1959_v9 }
  0x16   :  { %1881 = vmatmul.mubr.msk.bf16.gmra.mrb[4].mxu0 %vm392_vm0, %v1960_v10  ;;  %1913 = vmatmul.mubr.msk.bf16.gmra.mrb[4].mxu1 %vm392_vm0, %v1961_v11 }
  0x17   :  { %1884 = vmatprep.mubr.msk.bf16.mxu0 %vm392_vm0, %v1962_v12  ;;  %1916 = vmatprep.mubr.msk.bf16.mxu1 %vm392_vm0, %v1963_v13 }
  0x1e   :  { %1885 = vmatmul.mubr.msk.bf16.gmra.mrb[8].mxu0 %vm392_vm0, %v1964_v14  ;;  %1917 = vmatmul.mubr.msk.bf16.gmra.mrb[8].mxu1 %vm392_vm0, %v1965_v15 }
  0x1f   :  { %1888 = vmatprep.mubr.msk.bf16.mxu0 %vm392_vm0, %v1966_v16  ;;  %1920 = vmatprep.mubr.msk.bf16.mxu1 %vm392_vm0, %v1967_v17 }
  0x20   :  { %8 = vsyncpa [#allocation4], 0  ;;  %v1970_v20 = vld [vmem:[%s2251_s0 + $0x40] sm:$0xff]   ;;  %v1972_v22 = vld [vmem:[%s2251_s0 + $0x48] sm:$0xff]  }
  0x21   :  { %v1971_v21 = vld [vmem:[%s2251_s0 + $0xc0] sm:$0xff]   ;;  %v1973_v23 = vld [vmem:[%s2251_s0 + $0xc8] sm:$0xff]   ;;  %v1974_v24 = vld [vmem:[%s2251_s0 + $0x50] sm:$0xff]  }
  0x22   :  { %v1975_v25 = vld [vmem:[%s2251_s0 + $0xd0] sm:$0xff]   ;;  %v1976_v26 = vld [vmem:[%s2251_s0 + $0x58] sm:$0xff]   ;;  %v1978_v28 = vld [vmem:[%s2251_s0 + $0x60] sm:$0xff]  }
  0x23   :  { %v1977_v27 = vld [vmem:[%s2251_s0 + $0xd8] sm:$0xff]   ;;  %v1979_v29 = vld [vmem:[%s2251_s0 + $0xe0] sm:$0xff]   ;;  %v1980_v30 = vld [vmem:[%s2251_s0 + $0x68] sm:$0xff]  }
  0x24   :  { %v1981_v31 = vld [vmem:[%s2251_s0 + $0xe8] sm:$0xff]   ;;  %v1982_v32 = vld [vmem:[%s2251_s0 + $0x70] sm:$0xff]   ;;  %v1984_v34 = vld [vmem:[%s2251_s0 + $0x78] sm:$0xff]  }
  0x25   :  { %v1983_v33 = vld [vmem:[%s2251_s0 + $0xf0] sm:$0xff]   ;;  %v1985_v35 = vld [vmem:[%s2251_s0 + $0xf8] sm:$0xff]   ;;  %v2173_v36 = vld [vmem:[%s2253_s2] ss:$0 sm:$0xff]  ;;  %s2010_s0 = smov [#allocation3]  }
  0x26   :  { %1889 = vmatmul.mubr.msk.bf16.gmra.mrb[12].mxu0 %vm392_vm0, %v1968_v18  ;;  %1921 = vmatmul.mubr.msk.bf16.gmra.mrb[12].mxu1 %vm392_vm0, %v1969_v19  ;;  %s1437_s2 = sshll.u32 %s2010_s0, 4  ;;  %s1438_s2 = int_to_ptr.vmem [resolvable:$true] %s1437_s2 }
  0x27   :  { %1892 = vmatprep.mubr.msk.bf16.mxu0 %vm392_vm0, %v1970_v20  ;;  %1924 = vmatprep.mubr.msk.bf16.mxu1 %vm392_vm0, %v1971_v21  ;;  %s1986_s27 = scalar_lea.vmem %s1438_s2, 4096  ;;  %p1991_p1 = scmp.lt.s32.totalorder %s1438_s2, %s1438_s2 }
  0x28   :  { %p1987_p0 = scmp.ne.s32.totalorder %s1438_s2, %s1986_s27  ;;  %p1992_p2 = scmp.lt.s32.totalorder %s1986_s27, %s1986_s27 }
  0x2a   :  { %p1993_p3 = por %p1992_p2, %p1991_p1 }
  0x2c   :  { %p1994_p4 = pnand %p1993_p3, %p1987_p0 }
  0x2e   :  { %1893 = vmatmul.mubr.msk.bf16.gmra.mrb[16].mxu0 %vm392_vm0, %v1972_v22  ;;  %1925 = vmatmul.mubr.msk.bf16.gmra.mrb[16].mxu1 %vm392_vm0, %v1973_v23 }
  0x2f   :  { %1896 = vmatprep.mubr.msk.bf16.mxu0 %vm392_vm0, %v1974_v24  ;;  %1928 = vmatprep.mubr.msk.bf16.mxu1 %vm392_vm0, %v1975_v25 }
  0x36   :  { %1897 = vmatmul.mubr.msk.bf16.gmra.mrb[20].mxu0 %vm392_vm0, %v1976_v26  ;;  %1929 = vmatmul.mubr.msk.bf16.gmra.mrb[20].mxu1 %vm392_vm0, %v1977_v27 }
  0x37   :  { %1900 = vmatprep.mubr.msk.bf16.mxu0 %vm392_vm0, %v1978_v28  ;;  %1932 = vmatprep.mubr.msk.bf16.mxu1 %vm392_vm0, %v1979_v29 }
  0x3e   :  { %1901 = vmatmul.mubr.msk.bf16.gmra.mrb[24].mxu0 %vm392_vm0, %v1980_v30  ;;  %1933 = vmatmul.mubr.msk.bf16.gmra.mrb[24].mxu1 %vm392_vm0, %v1981_v31 }
  0x3f   :  { %1904 = vmatprep.mubr.msk.bf16.mxu0 %vm392_vm0, %v1982_v32  ;;  %1936 = vmatprep.mubr.msk.bf16.mxu1 %vm392_vm0, %v1983_v33 }
  0x46   :  { %1905 = vmatmul.mubr.msk.bf16.gmra.mrb[28].mxu0 %vm392_vm0, %v1984_v34  ;;  %1937 = vmatmul.mubr.msk.bf16.gmra.mrb[28].mxu1 %vm392_vm0, %v1985_v35 }
  0xe1   :  { %v1878_v37 = vpop.f32.mrb[0].mxu0  ;;  %v1910_v38 = vpop.f32.mrb[0].mxu1 }
  0xe2   :  { %v986_v39 = vadd.f32 %v1878_v37, %v2173_v36  ;;  %v1018_v40 = vadd.f32 %v1910_v38, %v2173_v36  ;;  %v527_v41 = vpop.f32.mrb[1].mxu0  ;;  %v655_v42 = vpop.f32.mrb[1].mxu1 }
  0xe3   :  { %v984_v43 = vadd.f32 %v2173_v36, %v527_v41  ;;  %v1016_v44 = vadd.f32 %v2173_v36, %v655_v42  ;;  %v1879_v45 = vpop.f32.mrb[2].mxu0  ;;  %v1911_v46 = vpop.f32.mrb[2].mxu1 }
  0xe4   :  { %v987_v47 = vadd.f32 %v1879_v45, %v2173_v36  ;;  %v1019_v48 = vadd.f32 %v1911_v46, %v2173_v36  ;;  %v530_v49 = vpop.f32.mrb[3].mxu0  ;;  %v658_v50 = vpop.f32.mrb[3].mxu1  ;;  %v1050_v53 = vmax.f32 %v986_v39, 0.0  ;;  %v1082_v54 = vmax.f32 %v1018_v40, 0.0 }
  0xe5   :  { %v985_v51 = vadd.f32 %v2173_v36, %v530_v49  ;;  %v1017_v52 = vadd.f32 %v2173_v36, %v658_v50  ;;  %v1048_v57 = vmax.f32 %v984_v43, 0.0  ;;  %v1080_v58 = vmax.f32 %v1016_v44, 0.0 }
  0xe6   :  { %v1051_v55 = vmax.f32 %v987_v47, 0.0  ;;  %v1083_v56 = vmax.f32 %v1019_v48, 0.0 }
  0xe7   :  { %v1049_v59 = vmax.f32 %v985_v51, 0.0  ;;  %v1081_v60 = vmax.f32 %v1017_v52, 0.0 }
  0xe8   :  { %v1652_v61 = vpack.c.bf16 %v1051_v55, %v1050_v53  ;;  %v1732_v62 = vpack.c.bf16 %v1083_v56, %v1082_v54 }
  0xe9   :  { %v1647_v63 = vpack.c.bf16 %v1049_v59, %v1048_v57  ;;  %v1727_v0 = vpack.c.bf16 %v1081_v60, %v1080_v58  ;;  %v1882_v1 = vpop.f32.mrb[4].mxu0  ;;  %v1914_v2 = vpop.f32.mrb[4].mxu1 }
  0xea   :  { %1804 = vst [vmem:[#allocation3 + $0x8] sm:$0xff] %v1652_v61   ;;  %1820 = vst [vmem:[#allocation3 + $0x88] sm:$0xff] %v1732_v62   ;;  %v990_v3 = vadd.f32 %v1882_v1, %v2173_v36  ;;  %v1022_v4 = vadd.f32 %v1914_v2, %v2173_v36  ;;  %v543_v5 = vpop.f32.mrb[5].mxu0  ;;  %v671_v6 = vpop.f32.mrb[5].mxu1 }
  0xeb   :  { %1648 = vst [vmem:[#allocation3] sm:$0xff] %v1647_v63   ;;  %1819 = vst [vmem:[#allocation3 + $0x80] sm:$0xff] %v1727_v0   ;;  %v988_v7 = vadd.f32 %v2173_v36, %v543_v5  ;;  %v1020_v8 = vadd.f32 %v2173_v36, %v671_v6  ;;  %v1883_v9 = vpop.f32.mrb[6].mxu0  ;;  %v1915_v10 = vpop.f32.mrb[6].mxu1 }
  0xec   :  { %v991_v11 = vadd.f32 %v1883_v9, %v2173_v36  ;;  %v1023_v12 = vadd.f32 %v1915_v10, %v2173_v36  ;;  %v546_v13 = vpop.f32.mrb[7].mxu0  ;;  %v674_v14 = vpop.f32.mrb[7].mxu1  ;;  %v1054_v17 = vmax.f32 %v990_v3, 0.0  ;;  %v1086_v18 = vmax.f32 %v1022_v4, 0.0 }
  0xed   :  { %v989_v15 = vadd.f32 %v2173_v36, %v546_v13  ;;  %v1021_v16 = vadd.f32 %v2173_v36, %v674_v14  ;;  %v1052_v21 = vmax.f32 %v988_v7, 0.0  ;;  %v1084_v22 = vmax.f32 %v1020_v8, 0.0 }
  0xee   :  { %v1055_v19 = vmax.f32 %v991_v11, 0.0  ;;  %v1087_v20 = vmax.f32 %v1023_v12, 0.0 }
  0xef   :  { %v1053_v23 = vmax.f32 %v989_v15, 0.0  ;;  %v1085_v24 = vmax.f32 %v1021_v16, 0.0 }
  0xf0   :  { %v1662_v25 = vpack.c.bf16 %v1055_v19, %v1054_v17  ;;  %v1742_v26 = vpack.c.bf16 %v1087_v20, %v1086_v18 }
  0xf1   :  { %v1657_v27 = vpack.c.bf16 %v1053_v23, %v1052_v21  ;;  %v1737_v28 = vpack.c.bf16 %v1085_v24, %v1084_v22  ;;  %v1886_v29 = vpop.f32.mrb[8].mxu0  ;;  %v1918_v30 = vpop.f32.mrb[8].mxu1 }
  0xf2   :  { %1806 = vst [vmem:[#allocation3 + $0x18] sm:$0xff] %v1662_v25   ;;  %1822 = vst [vmem:[#allocation3 + $0x98] sm:$0xff] %v1742_v26   ;;  %v994_v31 = vadd.f32 %v1886_v29, %v2173_v36  ;;  %v1026_v32 = vadd.f32 %v1918_v30, %v2173_v36  ;;  %v559_v33 = vpop.f32.mrb[9].mxu0  ;;  %v687_v34 = vpop.f32.mrb[9].mxu1 }
  0xf3   :  { %1805 = vst [vmem:[#allocation3 + $0x10] sm:$0xff] %v1657_v27   ;;  %1821 = vst [vmem:[#allocation3 + $0x90] sm:$0xff] %v1737_v28   ;;  %v992_v35 = vadd.f32 %v2173_v36, %v559_v33  ;;  %v1024_v37 = vadd.f32 %v2173_v36, %v687_v34  ;;  %v1887_v38 = vpop.f32.mrb[10].mxu0  ;;  %v1919_v39 = vpop.f32.mrb[10].mxu1 }
  0xf4   :  { %v995_v40 = vadd.f32 %v1887_v38, %v2173_v36  ;;  %v1027_v41 = vadd.f32 %v1919_v39, %v2173_v36  ;;  %v562_v42 = vpop.f32.mrb[11].mxu0  ;;  %v690_v43 = vpop.f32.mrb[11].mxu1  ;;  %v1058_v46 = vmax.f32 %v994_v31, 0.0  ;;  %v1090_v47 = vmax.f32 %v1026_v32, 0.0 }
  0xf5   :  { %v993_v44 = vadd.f32 %v2173_v36, %v562_v42  ;;  %v1025_v45 = vadd.f32 %v2173_v36, %v690_v43  ;;  %v1056_v50 = vmax.f32 %v992_v35, 0.0  ;;  %v1088_v51 = vmax.f32 %v1024_v37, 0.0 }
  0xf6   :  { %v1059_v48 = vmax.f32 %v995_v40, 0.0  ;;  %v1091_v49 = vmax.f32 %v1027_v41, 0.0 }
  0xf7   :  { %v1057_v52 = vmax.f32 %v993_v44, 0.0  ;;  %v1089_v53 = vmax.f32 %v1025_v45, 0.0 }
  0xf8   :  { %v1672_v54 = vpack.c.bf16 %v1059_v48, %v1058_v46  ;;  %v1752_v55 = vpack.c.bf16 %v1091_v49, %v1090_v47 }
  0xf9   :  { %v1667_v56 = vpack.c.bf16 %v1057_v52, %v1056_v50  ;;  %v1747_v57 = vpack.c.bf16 %v1089_v53, %v1088_v51  ;;  %v1890_v58 = vpop.f32.mrb[12].mxu0  ;;  %v1922_v59 = vpop.f32.mrb[12].mxu1 }
  0xfa   :  { %1808 = vst [vmem:[#allocation3 + $0x28] sm:$0xff] %v1672_v54   ;;  %1824 = vst [vmem:[#allocation3 + $0xa8] sm:$0xff] %v1752_v55   ;;  %v998_v60 = vadd.f32 %v1890_v58, %v2173_v36  ;;  %v1030_v61 = vadd.f32 %v1922_v59, %v2173_v36  ;;  %v575_v62 = vpop.f32.mrb[13].mxu0  ;;  %v703_v63 = vpop.f32.mrb[13].mxu1 }
  0xfb   :  { %1807 = vst [vmem:[#allocation3 + $0x20] sm:$0xff] %v1667_v56   ;;  %1823 = vst [vmem:[#allocation3 + $0xa0] sm:$0xff] %v1747_v57   ;;  %v996_v0 = vadd.f32 %v2173_v36, %v575_v62  ;;  %v1028_v1 = vadd.f32 %v2173_v36, %v703_v63  ;;  %v1891_v2 = vpop.f32.mrb[14].mxu0  ;;  %v1923_v3 = vpop.f32.mrb[14].mxu1 }
  0xfc   :  { %v999_v4 = vadd.f32 %v1891_v2, %v2173_v36  ;;  %v1031_v5 = vadd.f32 %v1923_v3, %v2173_v36  ;;  %v578_v6 = vpop.f32.mrb[15].mxu0  ;;  %v706_v7 = vpop.f32.mrb[15].mxu1  ;;  %v1062_v10 = vmax.f32 %v998_v60, 0.0  ;;  %v1094_v11 = vmax.f32 %v1030_v61, 0.0 }
  0xfd   :  { %v997_v8 = vadd.f32 %v2173_v36, %v578_v6  ;;  %v1029_v9 = vadd.f32 %v2173_v36, %v706_v7  ;;  %v1060_v14 = vmax.f32 %v996_v0, 0.0  ;;  %v1092_v15 = vmax.f32 %v1028_v1, 0.0 }
  0xfe   :  { %v1063_v12 = vmax.f32 %v999_v4, 0.0  ;;  %v1095_v13 = vmax.f32 %v1031_v5, 0.0 }
  0xff   :  { %v1061_v16 = vmax.f32 %v997_v8, 0.0  ;;  %v1093_v17 = vmax.f32 %v1029_v9, 0.0 }
 0x100   :  { %v1682_v18 = vpack.c.bf16 %v1063_v12, %v1062_v10  ;;  %v1762_v19 = vpack.c.bf16 %v1095_v13, %v1094_v11 }
 0x101   :  { %v1677_v20 = vpack.c.bf16 %v1061_v16, %v1060_v14  ;;  %v1757_v21 = vpack.c.bf16 %v1093_v17, %v1092_v15  ;;  %v1894_v22 = vpop.f32.mrb[16].mxu0  ;;  %v1926_v23 = vpop.f32.mrb[16].mxu1 }
 0x102   :  { %1810 = vst [vmem:[#allocation3 + $0x38] sm:$0xff] %v1682_v18   ;;  %1826 = vst [vmem:[#allocation3 + $0xb8] sm:$0xff] %v1762_v19   ;;  %v1002_v24 = vadd.f32 %v1894_v22, %v2173_v36  ;;  %v1034_v25 = vadd.f32 %v1926_v23, %v2173_v36  ;;  %v591_v26 = vpop.f32.mrb[17].mxu0  ;;  %v719_v27 = vpop.f32.mrb[17].mxu1 }
 0x103   :  { %1809 = vst [vmem:[#allocation3 + $0x30] sm:$0xff] %v1677_v20   ;;  %1825 = vst [vmem:[#allocation3 + $0xb0] sm:$0xff] %v1757_v21   ;;  %v1000_v28 = vadd.f32 %v2173_v36, %v591_v26  ;;  %v1032_v29 = vadd.f32 %v2173_v36, %v719_v27  ;;  %v1895_v30 = vpop.f32.mrb[18].mxu0  ;;  %v1927_v31 = vpop.f32.mrb[18].mxu1 }
 0x104   :  { %v1003_v32 = vadd.f32 %v1895_v30, %v2173_v36  ;;  %v1035_v33 = vadd.f32 %v1927_v31, %v2173_v36  ;;  %v594_v34 = vpop.f32.mrb[19].mxu0  ;;  %v722_v35 = vpop.f32.mrb[19].mxu1  ;;  %v1066_v39 = vmax.f32 %v1002_v24, 0.0  ;;  %v1098_v40 = vmax.f32 %v1034_v25, 0.0 }
 0x105   :  { %v1001_v37 = vadd.f32 %v2173_v36, %v594_v34  ;;  %v1033_v38 = vadd.f32 %v2173_v36, %v722_v35  ;;  %v1064_v43 = vmax.f32 %v1000_v28, 0.0  ;;  %v1096_v44 = vmax.f32 %v1032_v29, 0.0 }
 0x106   :  { %v1067_v41 = vmax.f32 %v1003_v32, 0.0  ;;  %v1099_v42 = vmax.f32 %v1035_v33, 0.0 }
 0x107   :  { %v1065_v45 = vmax.f32 %v1001_v37, 0.0  ;;  %v1097_v46 = vmax.f32 %v1033_v38, 0.0 }
 0x108   :  { %v1692_v47 = vpack.c.bf16 %v1067_v41, %v1066_v39  ;;  %v1772_v48 = vpack.c.bf16 %v1099_v42, %v1098_v40 }
 0x109   :  { %v1687_v49 = vpack.c.bf16 %v1065_v45, %v1064_v43  ;;  %v1767_v50 = vpack.c.bf16 %v1097_v46, %v1096_v44  ;;  %v1898_v51 = vpop.f32.mrb[20].mxu0  ;;  %v1930_v52 = vpop.f32.mrb[20].mxu1 }
 0x10a   :  { %1812 = vst [vmem:[#allocation3 + $0x48] sm:$0xff] %v1692_v47   ;;  %1828 = vst [vmem:[#allocation3 + $0xc8] sm:$0xff] %v1772_v48   ;;  %v1006_v53 = vadd.f32 %v1898_v51, %v2173_v36  ;;  %v1038_v54 = vadd.f32 %v1930_v52, %v2173_v36  ;;  %v607_v55 = vpop.f32.mrb[21].mxu0  ;;  %v735_v56 = vpop.f32.mrb[21].mxu1 }
 0x10b   :  { %1811 = vst [vmem:[#allocation3 + $0x40] sm:$0xff] %v1687_v49   ;;  %1827 = vst [vmem:[#allocation3 + $0xc0] sm:$0xff] %v1767_v50   ;;  %v1004_v57 = vadd.f32 %v2173_v36, %v607_v55  ;;  %v1036_v58 = vadd.f32 %v2173_v36, %v735_v56  ;;  %v1899_v59 = vpop.f32.mrb[22].mxu0  ;;  %v1931_v60 = vpop.f32.mrb[22].mxu1 }
 0x10c   :  { %v1007_v61 = vadd.f32 %v1899_v59, %v2173_v36  ;;  %v1039_v62 = vadd.f32 %v1931_v60, %v2173_v36  ;;  %v610_v63 = vpop.f32.mrb[23].mxu0  ;;  %v738_v0 = vpop.f32.mrb[23].mxu1  ;;  %v1070_v3 = vmax.f32 %v1006_v53, 0.0  ;;  %v1102_v4 = vmax.f32 %v1038_v54, 0.0 }
 0x10d   :  { %v1005_v1 = vadd.f32 %v2173_v36, %v610_v63  ;;  %v1037_v2 = vadd.f32 %v2173_v36, %v738_v0  ;;  %v1068_v7 = vmax.f32 %v1004_v57, 0.0  ;;  %v1100_v8 = vmax.f32 %v1036_v58, 0.0 }
 0x10e   :  { %v1071_v5 = vmax.f32 %v1007_v61, 0.0  ;;  %v1103_v6 = vmax.f32 %v1039_v62, 0.0 }
 0x10f   :  { %v1069_v9 = vmax.f32 %v1005_v1, 0.0  ;;  %v1101_v10 = vmax.f32 %v1037_v2, 0.0 }
 0x110   :  { %v1702_v11 = vpack.c.bf16 %v1071_v5, %v1070_v3  ;;  %v1782_v12 = vpack.c.bf16 %v1103_v6, %v1102_v4 }
 0x111   :  { %v1697_v13 = vpack.c.bf16 %v1069_v9, %v1068_v7  ;;  %v1777_v14 = vpack.c.bf16 %v1101_v10, %v1100_v8  ;;  %v1902_v15 = vpop.f32.mrb[24].mxu0  ;;  %v1934_v16 = vpop.f32.mrb[24].mxu1 }
 0x112   :  { %1814 = vst [vmem:[#allocation3 + $0x58] sm:$0xff] %v1702_v11   ;;  %1830 = vst [vmem:[#allocation3 + $0xd8] sm:$0xff] %v1782_v12   ;;  %v1010_v17 = vadd.f32 %v1902_v15, %v2173_v36  ;;  %v1042_v18 = vadd.f32 %v1934_v16, %v2173_v36  ;;  %v623_v19 = vpop.f32.mrb[25].mxu0  ;;  %v751_v20 = vpop.f32.mrb[25].mxu1 }
 0x113   :  { %1813 = vst [vmem:[#allocation3 + $0x50] sm:$0xff] %v1697_v13   ;;  %1829 = vst [vmem:[#allocation3 + $0xd0] sm:$0xff] %v1777_v14   ;;  %v1008_v21 = vadd.f32 %v2173_v36, %v623_v19  ;;  %v1040_v22 = vadd.f32 %v2173_v36, %v751_v20  ;;  %v1903_v23 = vpop.f32.mrb[26].mxu0  ;;  %v1935_v24 = vpop.f32.mrb[26].mxu1 }
 0x114   :  { %v1011_v25 = vadd.f32 %v1903_v23, %v2173_v36  ;;  %v1043_v26 = vadd.f32 %v1935_v24, %v2173_v36  ;;  %v626_v27 = vpop.f32.mrb[27].mxu0  ;;  %v754_v28 = vpop.f32.mrb[27].mxu1  ;;  %v1074_v31 = vmax.f32 %v1010_v17, 0.0  ;;  %v1106_v32 = vmax.f32 %v1042_v18, 0.0 }
 0x115   :  { %v1009_v29 = vadd.f32 %v2173_v36, %v626_v27  ;;  %v1041_v30 = vadd.f32 %v2173_v36, %v754_v28  ;;  %v1072_v35 = vmax.f32 %v1008_v21, 0.0  ;;  %v1104_v37 = vmax.f32 %v1040_v22, 0.0 }
 0x116   :  { %v1075_v33 = vmax.f32 %v1011_v25, 0.0  ;;  %v1107_v34 = vmax.f32 %v1043_v26, 0.0 }
 0x117   :  { %v1073_v38 = vmax.f32 %v1009_v29, 0.0  ;;  %v1105_v39 = vmax.f32 %v1041_v30, 0.0 }
 0x118   :  { %v1712_v40 = vpack.c.bf16 %v1075_v33, %v1074_v31  ;;  %v1792_v41 = vpack.c.bf16 %v1107_v34, %v1106_v32 }
 0x119   :  { %v1707_v42 = vpack.c.bf16 %v1073_v38, %v1072_v35  ;;  %v1787_v43 = vpack.c.bf16 %v1105_v39, %v1104_v37  ;;  %v1906_v44 = vpop.f32.mrb[28].mxu0  ;;  %v1938_v45 = vpop.f32.mrb[28].mxu1 }
 0x11a   :  { %1816 = vst [vmem:[#allocation3 + $0x68] sm:$0xff] %v1712_v40   ;;  %1832 = vst [vmem:[#allocation3 + $0xe8] sm:$0xff] %v1792_v41   ;;  %v1014_v46 = vadd.f32 %v1906_v44, %v2173_v36  ;;  %v1046_v47 = vadd.f32 %v1938_v45, %v2173_v36  ;;  %v639_v48 = vpop.f32.mrb[29].mxu0  ;;  %v767_v49 = vpop.f32.mrb[29].mxu1 }
 0x11b   :  { %1815 = vst [vmem:[#allocation3 + $0x60] sm:$0xff] %v1707_v42   ;;  %1831 = vst [vmem:[#allocation3 + $0xe0] sm:$0xff] %v1787_v43   ;;  %v1012_v50 = vadd.f32 %v2173_v36, %v639_v48  ;;  %v1044_v51 = vadd.f32 %v2173_v36, %v767_v49  ;;  %v1907_v52 = vpop.f32.mrb[30].mxu0  ;;  %v1939_v53 = vpop.f32.mrb[30].mxu1 }
 0x11c   :  { %v1015_v54 = vadd.f32 %v1907_v52, %v2173_v36  ;;  %v1047_v55 = vadd.f32 %v1939_v53, %v2173_v36  ;;  %v642_v56 = vpop.f32.mrb[31].mxu0  ;;  %v770_v57 = vpop.f32.mrb[31].mxu1  ;;  %v1078_v60 = vmax.f32 %v1014_v46, 0.0  ;;  %v1110_v61 = vmax.f32 %v1046_v47, 0.0 }
 0x11d   :  { %v1013_v58 = vadd.f32 %v2173_v36, %v642_v56  ;;  %v1045_v59 = vadd.f32 %v2173_v36, %v770_v57  ;;  %v1076_v0 = vmax.f32 %v1012_v50, 0.0  ;;  %v1108_v1 = vmax.f32 %v1044_v51, 0.0 }
 0x11e   :  { %v1079_v62 = vmax.f32 %v1015_v54, 0.0  ;;  %v1111_v63 = vmax.f32 %v1047_v55, 0.0 }
 0x11f   :  { %v1077_v2 = vmax.f32 %v1013_v58, 0.0  ;;  %v1109_v3 = vmax.f32 %v1045_v59, 0.0 }
 0x120   :  { %v1722_v4 = vpack.c.bf16 %v1079_v62, %v1078_v60  ;;  %v1802_v5 = vpack.c.bf16 %v1111_v63, %v1110_v61 }
 0x121   :  { %v1717_v6 = vpack.c.bf16 %v1077_v2, %v1076_v0  ;;  %v1797_v7 = vpack.c.bf16 %v1109_v3, %v1108_v1 }
 0x122   :  { %1818 = vst [vmem:[#allocation3 + $0x78] sm:$0xff] %v1722_v4   ;;  %1834 = vst [vmem:[#allocation3 + $0xf8] sm:$0xff] %v1802_v5  }
 0x123   :  { %1817 = vst [vmem:[#allocation3 + $0x70] sm:$0xff] %v1717_v6   ;;  %1833 = vst [vmem:[#allocation3 + $0xf0] sm:$0xff] %v1797_v7  }
 0x124   :  { %1997 = shalt.err (!%p1994_p4)
}
 0x125   :  { %s1998_s30 = scalar_lea.hbm %s2254_s3, 4096 }
 0x126   :  { %p1999_p5 = scmp.ne.s32.totalorder %s2254_s3, %s1998_s30  ;;  %p2002_p6 = scmp.lt.u32.totalorder %s1998_s30, %s2254_s3 }
 0x128   :  { %p2004_p7 = pnand %p2002_p6, %p1999_p5 }
 0x12a   :  { %2007 = shalt.err (!%p2004_p7)
}
 0x12b   :  { %s2011_s8 = smov 64   ;;  %s2012_s9 = smov 4  }
 0x12c   :  { %1443 = dma.vmem_to_hbm [thread:$0]  %s1438_s2, 4096, %s2254_s3, [#allocation4], %s2011_s8, %s2011_s8, %s2012_s9  }
 0x12d   :  { %2008 = dma.done.wait [#allocation4], 4096  }
 0x12e   :  { %2009 = vsyncadd [#allocation4], 4294963200 }
 0x12f   :  { %1447 = vsyncpa [#allocation4], 1 }

</bundles_post_ra>
